<compile_context>
chip_gen: v5e
topology: v5e:2x2
jax: 0.10.0
libtpu: 0.0.40
codegen_flags: <defaults>
</compile_context>

<pallas_src>
import functools
import math

import jax
import jax.numpy as jnp
from jax.experimental import pallas as pl
from jax.experimental.pallas import tpu as pltpu


# ----------------------------------------------------------------------------
# Kernel
# ----------------------------------------------------------------------------
def _two_stage_loss_kernel(yhp_ref, dardar_ref, mask_ref,
                           bce_acc_ref, l1_acc_ref, *,
                           cloud_free_constant, in_cloud_loss,
                           weight_along_overpass, acc_rows, n_groups):
    # Zero this (batch, split)'s resident accumulators at its first row tile.
    @pl.when(pl.program_id(2) == 0)
    def _():
        bce_acc_ref[...] = jnp.zeros_like(bce_acc_ref)
        l1_acc_ref[...] = jnp.zeros_like(l1_acc_ref)

    f32 = jnp.float32

    # Walk the tile in (acc_rows, L) sublane slabs with static offsets and fold
    # each slab straight into the resident accumulators: vreg live ranges stay
    # bounded to one slab, so large tiles do not spill.  n_groups is a small
    # static int (<= 64), so this loop is fully unrolled at trace time.
    for g in range(n_groups):
        rows = pl.ds(g * acc_rows, acc_rows)
        yv = yhp_ref[0, rows, :].astype(f32)      # value predictions
        yb = yhp_ref[1, rows, :].astype(f32)      # binary logits
        d = dardar_ref[rows, :].astype(f32)       # dardar target
        m = mask_ref[rows, :].astype(f32)         # overpass mask (int8/bool/f32)

        # dardar_binary = (dardar > cfc).float() * overpass_mask
        t = (d > cloud_free_constant).astype(f32) * m

        # F.binary_cross_entropy(sigmoid(x), t) == stable BCE-with-logits:
        #   max(x, 0) - x*t + log1p(exp(-|x|))
        bce = jnp.maximum(yb, 0.0) - yb * t + jnp.log1p(jnp.exp(-jnp.abs(yb)))
        if weight_along_overpass:
            bce = bce * m

        if in_cloud_loss:
            l1 = jnp.abs((yv - d) * t)            # == |yv*t - d*t|
        else:
            l1 = jnp.abs(yv - d)

        bce_acc_ref[...] += bce
        l1_acc_ref[...] += l1


# ----------------------------------------------------------------------------
# Layout helpers
# ----------------------------------------------------------------------------
def _row_packing(*dtypes):
    """Coarsest sublane packing across dtypes: 8 (f32), 16 (bf16), 32 (int8)."""
    mult = 8
    for dt in dtypes:
        mult = max(mult, 8 * max(1, 4 // jnp.dtype(dt).itemsize))
    return mult


def _pick_tile_rows(mb, max_rows, row_mult):
    """Row-tile size (multiple of row_mult or the full row count) and the
    (possibly padded) total row count."""
    if mb <= max_rows:
        return mb, mb                              # full plane per step: legal
    r = max(max_rows, row_mult)
    r -= r % row_mult
    while r >= row_mult:
        if mb % r == 0:
            return r, mb
        r -= row_mult
    # No clean divisor: pad the row count up to a multiple of a clean tile.
    tile = max(min(max_rows, mb), row_mult)
    tile -= tile % row_mult
    return tile, -(-mb // tile) * tile


def _choose_layout(spatial, max_tile_elems, row_mult):
    """Lane-dense [Mb, L] view of one H*W plane -> (L, Mb, tile_rows, S_pad)."""
    if spatial < 128:
        return spatial, 1, 1, spatial              # tiny plane: one full row
    lane = next((c for c in (1024, 512, 256, 128) if spatial % c == 0), None)
    if lane is None:                               # needs lane padding
        lane = 128 if spatial <= 8 * 1024 else 1024
    mb = -(-spatial // lane)
    max_rows = max(1, min(max_tile_elems // lane, 512))   # bounds unrolled groups
    tile_rows, mb = _pick_tile_rows(mb, max_rows, row_mult)
    return lane, mb, tile_rows, mb * lane


# ----------------------------------------------------------------------------
# Wrapper
# ----------------------------------------------------------------------------
def two_stage_loss(y_hat_prime, dardar, overpass_mask, *,
                   cloud_free_constant, alpha=0.5, in_cloud_loss=True,
                   weight_along_overpass=False, max_tile_elems=None):
    """Pallas implementation of TwoStageLoss.forward.

    y_hat_prime   : [B, 2, H, W]  (ch 0 = value, ch 1 = binary logits)
    dardar        : [B, 1, H, W]
    overpass_mask : [B, H, W]     (bool / int8 / float — kept narrow in HBM)
    Returns dict of scalar f32 losses matching the PyTorch module.
    """
    B, C, H, W = y_hat_prime.shape
    assert C == 2, "y_hat_prime must have 2 channels"
    assert dardar.shape == (B, 1, H, W)
    assert overpass_mask.shape == (B, H, W)
    S = H * W

    # Never widen the mask in the wrapper (this kernel is HBM-bandwidth bound);
    # bool -> int8 keeps the stream at 1 B/elem, the f32 cast happens in-kernel.
    if overpass_mask.dtype == jnp.bool_:
        overpass_mask = overpass_mask.astype(jnp.int8)

    # Generation-aware tile / VMEM budget.
    try:
        vmem_capacity = int(pltpu.get_tpu_info().vmem_capacity_bytes)
    except Exception:
        vmem_capacity = 128 << 20
    if max_tile_elems is None:
        # v7x: 64 MiB VMEM/TC + 3.2 TB/s HBM -> ~2 MiB/f32-stream tiles suffice.
        # v5e/v6e: 128 MiB VMEM -> ~4 MiB tiles to amortize per-step overhead.
        max_tile_elems = (512 * 1024) if vmem_capacity <= (64 << 20) else (1024 * 1024)

    row_mult = _row_packing(y_hat_prime.dtype, dardar.dtype, overpass_mask.dtype)
    L, Mb, tile_rows, S_pad = _choose_layout(S, max_tile_elems, row_mult)
    n_tiles = Mb // tile_rows
    acc_rows = row_mult if tile_rows % row_mult == 0 else tile_rows
    n_groups = tile_rows // acc_rows
    n_pad = S_pad - S

    # Flatten each plane (free reshape: NCHW planes are contiguous).
    y3 = y_hat_prime.reshape(B, 2, S)
    d3 = dardar.reshape(B, 1, S)
    m2 = overpass_mask.reshape(B, S)
    if n_pad:
        # TODO(synk): padding materializes copies in HBM; only hit when H*W is
        # not a multiple of 128 (or has no clean row tiling).
        y3 = jnp.pad(y3, ((0, 0), (0, 0), (0, n_pad)))
        d3 = jnp.pad(d3, ((0, 0), (0, 0), (0, n_pad)))
        m2 = jnp.pad(m2, ((0, 0), (0, n_pad)))
    y4 = y3.reshape(B, 2, Mb, L)
    d4 = d3.reshape(B, 1, Mb, L)
    m3 = m2.reshape(B, Mb, L)

    # v7x megacore: with a single batch, split the row-tile axis into two
    # "parallel" halves so both TensorCores get work (harmless on 1-TC chips).
    P = 2 if (B == 1 and n_tiles >= 2 and n_tiles % 2 == 0) else 1
    npr = n_tiles // P

    kernel = functools.partial(
        _two_stage_loss_kernel,
        cloud_free_constant=float(cloud_free_constant),
        in_cloud_loss=bool(in_cloud_loss),
        weight_along_overpass=bool(weight_along_overpass),
        acc_rows=acc_rows, n_groups=n_groups)

    def _map_yhp(npr_):
        return lambda b, p, r: (b, 0, p * npr_ + r, 0)

    def _map_dardar(npr_):
        return lambda b, p, r: (b, 0, p * npr_ + r, 0)

    def _map_mask(npr_):
        return lambda b, p, r: (b, p * npr_ + r, 0)

    in_specs = [
        pl.BlockSpec((None, 2, tile_rows, L), _map_yhp(npr)),       # both channels
        pl.BlockSpec((None, None, tile_rows, L), _map_dardar(npr)),
        pl.BlockSpec((None, tile_rows, L), _map_mask(npr)),
    ]
    out_spec = pl.BlockSpec((None, None, acc_rows, L), lambda b, p, r: (b, p, 0, 0))
    out_struct = jax.ShapeDtypeStruct((B, P, acc_rows, L), jnp.float32)

    # VMEM budget: double-buffered input tiles (summed per dtype) + two resident
    # f32 accumulators.  Always set an explicit limit when the working set would
    # exceed v5e's 16 MiB scoped default; leave >=16 MiB compiler headroom.
    y_isz = jnp.dtype(y_hat_prime.dtype).itemsize
    d_isz = jnp.dtype(dardar.dtype).itemsize
    m_isz = jnp.dtype(overpass_mask.dtype).itemsize
    in_tile_bytes = tile_rows * L * (2 * y_isz + d_isz + m_isz)
    vmem_needed = 2 * in_tile_bytes + 2 * 2 * acc_rows * L * 4
    vmem_limit = None
    if vmem_needed > (12 << 20):
        vmem_limit = int(min(2 * vmem_needed + (4 << 20),
                             max(32 << 20, vmem_capacity - (16 << 20))))

    bce_part, l1_part = pl.pallas_call(
        kernel,
        out_shape=(out_struct, out_struct),
        grid_spec=pltpu.PrefetchScalarGridSpec(
            num_scalar_prefetch=0,
            grid=(B, P, npr),
            in_specs=in_specs,
            out_specs=[out_spec, out_spec]),
        compiler_params=pltpu.CompilerParams(
            dimension_semantics=("parallel", "parallel", "arbitrary"),
            vmem_limit_bytes=vmem_limit),
    )(y4, d4, m3)

    # Epilogue: cross-lane reduction + mean + alpha blend (a few scalar ops).
    numel = jnp.float32(B * S)                      # mean over B*1*H*W elements
    bce_sum = jnp.sum(bce_part)
    if n_pad and not weight_along_overpass:
        # Zero-padded positions contribute exactly log(2) each to the BCE sum.
        bce_sum = bce_sum - jnp.float32(B * n_pad) * jnp.float32(math.log(2.0))
    loss_binary = bce_sum / numel
    loss_values = jnp.sum(l1_part) / numel
    loss = alpha * loss_binary + (1.0 - alpha) * loss_values
    return {"loss": loss, "loss_binary": loss_binary, "loss_value": loss_values}


# ----------------------------------------------------------------------------
# Pure-JAX reference mirroring the PyTorch forward
# ----------------------------------------------------------------------------
def _reference(y_hat_prime, dardar, overpass_mask, *, cloud_free_constant,
               alpha, in_cloud_loss, weight_along_overpass):
    yv = y_hat_prime[:, 0:1, :, :].astype(jnp.float32)
    yb = y_hat_prime[:, 1:2, :, :].astype(jnp.float32)
    d = dardar.astype(jnp.float32)
    m = overpass_mask[:, None, :, :].astype(jnp.float32)
    t = (d > cloud_free_constant).astype(jnp.float32) * m
    bce = jnp.maximum(yb, 0.0) - yb * t + jnp.log1p(jnp.exp(-jnp.abs(yb)))
    if weight_along_overpass:
        bce = bce * m
    loss_binary = jnp.mean(bce)
    if in_cloud_loss:
        loss_values = jnp.mean(jnp.abs(yv * t - d * t))
    else:
        loss_values = jnp.mean(jnp.abs(yv - d))
    loss = alpha * loss_binary + (1.0 - alpha) * loss_values
    return {"loss": loss, "loss_binary": loss_binary, "loss_value": loss_values}


if __name__ == "__main__":
    cloud_free_constant = 0.1
    alpha = 0.5

    # (B, H, W, in_cloud, weight_overpass, y_dtype, mask_dtype, max_tile_elems)
    configs = [
        (2, 16, 16, True, False, jnp.float32, jnp.int8, None),       # tiny plane
        (2, 128, 128, False, True, jnp.float32, jnp.float32, None),  # 2 sublane groups
        (2, 128, 128, True, False, jnp.float32, jnp.float32, 8 * 1024),  # 2 row tiles
        (1, 256, 256, True, False, jnp.bfloat16, jnp.int8, 32 * 1024),   # megacore split
        (2, 12, 17, True, False, jnp.float32, jnp.int8, None),       # lane padding
    ]

    key = jax.random.PRNGKey(0)
    for (B, H, W, icl, wao, y_dt, m_dt, mte) in configs:
        key, k1, k2, k3 = jax.random.split(key, 4)
        y_hat_prime = jax.random.normal(
            k1, (B, 2, H, W), dtype=jnp.float32).astype(y_dt)
        dardar = jax.random.uniform(k2, (B, 1, H, W), dtype=jnp.float32)
        overpass_mask = (jax.random.uniform(k3, (B, H, W)) > 0.3).astype(m_dt)

        fn = jax.jit(functools.partial(
            two_stage_loss,
            cloud_free_constant=cloud_free_constant, alpha=alpha,
            in_cloud_loss=icl, weight_along_overpass=wao,
            max_tile_elems=mte))
        out = fn(y_hat_prime, dardar, overpass_mask)
        out = jax.tree_util.tree_map(jax.block_until_ready, out)

        ref = _reference(
            y_hat_prime, dardar, overpass_mask,
            cloud_free_constant=cloud_free_constant, alpha=alpha,
            in_cloud_loss=icl, weight_along_overpass=wao)

        for name in ("loss", "loss_binary", "loss_value"):
            assert jnp.allclose(out[name], ref[name], rtol=5e-4, atol=1e-6), (
                name, out[name], ref[name])

    print("KERNEL_OK")
</pallas_src>

<mosaic_0001>
module attributes {stable_mosaic.version = 11 : i64} {
  func.func @_two_stage_loss_kernel(%arg0: i32, %arg1: i32, %arg2: i32, %arg3: memref<1x2x1x256xf32, #tpu.memory_space<vmem>>, %arg4: memref<1x1x1x256xf32, #tpu.memory_space<vmem>>, %arg5: memref<1x1x256xi8, #tpu.memory_space<vmem>>, %arg6: memref<1x1x1x256xf32, #tpu.memory_space<vmem>>, %arg7: memref<1x1x1x256xf32, #tpu.memory_space<vmem>>) attributes {dimension_semantics = [#tpu.dimension_semantics<parallel>, #tpu.dimension_semantics<parallel>, #tpu.dimension_semantics<arbitrary>], iteration_bounds = array<i64: 2, 1, 1>, scalar_prefetch = 0 : i64, scratch_operands = 0 : i64, tpu.core_type = #tpu.core_type<tc>, window_params = [{transform_indices = @transform_0, window_bounds = array<i64: 1, 2, 1, 256>}, {transform_indices = @transform_1, window_bounds = array<i64: 1, 1, 1, 256>}, {transform_indices = @transform_2, window_bounds = array<i64: 1, 1, 256>}, {transform_indices = @transform_3, window_bounds = array<i64: 1, 1, 1, 256>}, {transform_indices = @transform_4, window_bounds = array<i64: 1, 1, 1, 256>}]} {
    %c0_i32 = arith.constant 0 : i32
    %0 = arith.cmpi eq, %arg2, %c0_i32 : i32
    %1 = arith.extui %0 : i1 to i32
    %c0_i32_0 = arith.constant 0 : i32
    %2 = arith.cmpi ne, %1, %c0_i32_0 : i32
    scf.if %2 {
      %cst_32 = arith.constant 0.000000e+00 : f32
      %42 = vector.broadcast %cst_32 : f32 to vector<1x256xf32>
      %c0_33 = arith.constant 0 : index
      %c0_34 = arith.constant 0 : index
      %c0_35 = arith.constant 0 : index
      %c0_36 = arith.constant 0 : index
      %43 = vector.load %arg6[%c0_33, %c0_34, %c0_35, %c0_36] : memref<1x1x1x256xf32, #tpu.memory_space<vmem>>, vector<1x1x1x256xf32>
      %44 = vector.shape_cast %43 : vector<1x1x1x256xf32> to vector<1x256xf32>
      %45 = vector.shape_cast %42 : vector<1x256xf32> to vector<1x1x1x256xf32>
      tpu.vector_store %arg6[%c0_33, %c0_34, %c0_35, %c0_36], %45 {strides = array<i32>} : memref<1x1x1x256xf32, #tpu.memory_space<vmem>>, vector<1x1x1x256xf32>,
      %cst_37 = arith.constant 0.000000e+00 : f32
      %46 = vector.broadcast %cst_37 : f32 to vector<1x256xf32>
      %c0_38 = arith.constant 0 : index
      %c0_39 = arith.constant 0 : index
      %c0_40 = arith.constant 0 : index
      %c0_41 = arith.constant 0 : index
      %47 = vector.load %arg7[%c0_38, %c0_39, %c0_40, %c0_41] : memref<1x1x1x256xf32, #tpu.memory_space<vmem>>, vector<1x1x1x256xf32>
      %48 = vector.shape_cast %47 : vector<1x1x1x256xf32> to vector<1x256xf32>
      %49 = vector.shape_cast %46 : vector<1x256xf32> to vector<1x1x1x256xf32>
      tpu.vector_store %arg7[%c0_38, %c0_39, %c0_40, %c0_41], %49 {strides = array<i32>} : memref<1x1x1x256xf32, #tpu.memory_space<vmem>>, vector<1x1x1x256xf32>,
    } else {
    }
    %c0 = arith.constant 0 : index
    %c0_1 = arith.constant 0 : index
    %c0_2 = arith.constant 0 : index
    %c0_3 = arith.constant 0 : index
    %3 = vector.load %arg3[%c0, %c0_1, %c0_2, %c0_3] : memref<1x2x1x256xf32, #tpu.memory_space<vmem>>, vector<1x1x1x256xf32>
    %4 = vector.shape_cast %3 : vector<1x1x1x256xf32> to vector<1x256xf32>
    %c0_4 = arith.constant 0 : index
    %c1 = arith.constant 1 : index
    %c0_5 = arith.constant 0 : index
    %c0_6 = arith.constant 0 : index
    %5 = vector.load %arg3[%c0_4, %c1, %c0_5, %c0_6] : memref<1x2x1x256xf32, #tpu.memory_space<vmem>>, vector<1x1x1x256xf32>
    %6 = vector.shape_cast %5 : vector<1x1x1x256xf32> to vector<1x256xf32>
    %c0_7 = arith.constant 0 : index
    %c0_8 = arith.constant 0 : index
    %c0_9 = arith.constant 0 : index
    %c0_10 = arith.constant 0 : index
    %7 = vector.load %arg4[%c0_7, %c0_8, %c0_9, %c0_10] : memref<1x1x1x256xf32, #tpu.memory_space<vmem>>, vector<1x1x1x256xf32>
    %8 = vector.shape_cast %7 : vector<1x1x1x256xf32> to vector<1x256xf32>
    %c0_11 = arith.constant 0 : index
    %c0_12 = arith.constant 0 : index
    %c0_13 = arith.constant 0 : index
    %9 = vector.load %arg5[%c0_11, %c0_12, %c0_13] : memref<1x1x256xi8, #tpu.memory_space<vmem>>, vector<1x1x256xi8>
    %10 = vector.shape_cast %9 : vector<1x1x256xi8> to vector<1x256xi8>
    %11 = arith.sitofp %10 : vector<1x256xi8> to vector<1x256xf32>
    %cst = arith.constant 1.000000e-01 : f32
    %12 = vector.broadcast %cst : f32 to vector<1x256xf32>
    %13 = arith.cmpf ogt, %8, %12 : vector<1x256xf32>
    %14 = arith.extui %13 : vector<1x256xi1> to vector<1x256xi32>
    %15 = arith.sitofp %14 : vector<1x256xi32> to vector<1x256xf32>
    %16 = arith.mulf %15, %11 : vector<1x256xf32>
    %cst_14 = arith.constant 0.000000e+00 : f32
    %17 = vector.broadcast %cst_14 : f32 to vector<1x256xf32>
    %18 = arith.maximumf %6, %17 : vector<1x256xf32>
    %19 = arith.mulf %6, %16 : vector<1x256xf32>
    %20 = arith.subf %18, %19 : vector<1x256xf32>
    %21 = math.absf %6 : vector<1x256xf32>
    %cst_15 = arith.constant 0.000000e+00 : f32
    %22 = vector.broadcast %cst_15 : f32 to vector<1x256xf32>
    %23 = arith.subf %22, %21 : vector<1x256xf32>
    %24 = math.exp %23 : vector<1x256xf32>
    %25 = math.log1p %24 : vector<1x256xf32>
    %26 = arith.addf %20, %25 : vector<1x256xf32>
    %27 = arith.subf %4, %8 : vector<1x256xf32>
    %28 = arith.mulf %27, %16 : vector<1x256xf32>
    %29 = math.absf %28 : vector<1x256xf32>
    %c0_16 = arith.constant 0 : index
    %c0_17 = arith.constant 0 : index
    %c0_18 = arith.constant 0 : index
    %c0_19 = arith.constant 0 : index
    %30 = vector.load %arg6[%c0_16, %c0_17, %c0_18, %c0_19] : memref<1x1x1x256xf32, #tpu.memory_space<vmem>>, vector<1x1x1x256xf32>
    %31 = vector.shape_cast %30 : vector<1x1x1x256xf32> to vector<1x256xf32>
    %32 = arith.addf %31, %26 : vector<1x256xf32>
    %c0_20 = arith.constant 0 : index
    %c0_21 = arith.constant 0 : index
    %c0_22 = arith.constant 0 : index
    %c0_23 = arith.constant 0 : index
    %33 = vector.load %arg6[%c0_20, %c0_21, %c0_22, %c0_23] : memref<1x1x1x256xf32, #tpu.memory_space<vmem>>, vector<1x1x1x256xf32>
    %34 = vector.shape_cast %33 : vector<1x1x1x256xf32> to vector<1x256xf32>
    %35 = vector.shape_cast %32 : vector<1x256xf32> to vector<1x1x1x256xf32>
    tpu.vector_store %arg6[%c0_20, %c0_21, %c0_22, %c0_23], %35 {strides = array<i32>} : memref<1x1x1x256xf32, #tpu.memory_space<vmem>>, vector<1x1x1x256xf32>,
    %c0_24 = arith.constant 0 : index
    %c0_25 = arith.constant 0 : index
    %c0_26 = arith.constant 0 : index
    %c0_27 = arith.constant 0 : index
    %36 = vector.load %arg7[%c0_24, %c0_25, %c0_26, %c0_27] : memref<1x1x1x256xf32, #tpu.memory_space<vmem>>, vector<1x1x1x256xf32>
    %37 = vector.shape_cast %36 : vector<1x1x1x256xf32> to vector<1x256xf32>
    %38 = arith.addf %37, %29 : vector<1x256xf32>
    %c0_28 = arith.constant 0 : index
    %c0_29 = arith.constant 0 : index
    %c0_30 = arith.constant 0 : index
    %c0_31 = arith.constant 0 : index
    %39 = vector.load %arg7[%c0_28, %c0_29, %c0_30, %c0_31] : memref<1x1x1x256xf32, #tpu.memory_space<vmem>>, vector<1x1x1x256xf32>
    %40 = vector.shape_cast %39 : vector<1x1x1x256xf32> to vector<1x256xf32>
    %41 = vector.shape_cast %38 : vector<1x256xf32> to vector<1x1x1x256xf32>
    tpu.vector_store %arg7[%c0_28, %c0_29, %c0_30, %c0_31], %41 {strides = array<i32>} : memref<1x1x1x256xf32, #tpu.memory_space<vmem>>, vector<1x1x1x256xf32>,
    return
  }
  func.func @transform_0(%arg0: i32, %arg1: i32, %arg2: i32) -> (i32, i32, i32, i32) {
    %c1_i32 = arith.constant 1 : i32
    %0 = arith.muli %arg1, %c1_i32 : i32
    %1 = arith.addi %0, %arg2 : i32
    %c0_i32 = arith.constant 0 : i32
    %c0_i32_0 = arith.constant 0 : i32
    %c0_i32_1 = arith.constant 0 : i32
    return %arg0, %c0_i32, %1, %c0_i32_0 : i32, i32, i32, i32
  }
  func.func @transform_1(%arg0: i32, %arg1: i32, %arg2: i32) -> (i32, i32, i32, i32) {
    %c1_i32 = arith.constant 1 : i32
    %0 = arith.muli %arg1, %c1_i32 : i32
    %1 = arith.addi %0, %arg2 : i32
    %c0_i32 = arith.constant 0 : i32
    %c0_i32_0 = arith.constant 0 : i32
    %c0_i32_1 = arith.constant 0 : i32
    return %arg0, %c0_i32, %1, %c0_i32_0 : i32, i32, i32, i32
  }
  func.func @transform_2(%arg0: i32, %arg1: i32, %arg2: i32) -> (i32, i32, i32) {
    %c1_i32 = arith.constant 1 : i32
    %0 = arith.muli %arg1, %c1_i32 : i32
    %1 = arith.addi %0, %arg2 : i32
    %c0_i32 = arith.constant 0 : i32
    %c0_i32_0 = arith.constant 0 : i32
    return %arg0, %1, %c0_i32 : i32, i32, i32
  }
  func.func @transform_3(%arg0: i32, %arg1: i32, %arg2: i32) -> (i32, i32, i32, i32) {
    %c0_i32 = arith.constant 0 : i32
    %c0_i32_0 = arith.constant 0 : i32
    %c0_i32_1 = arith.constant 0 : i32
    return %arg0, %arg1, %c0_i32, %c0_i32_0 : i32, i32, i32, i32
  }
  func.func @transform_4(%arg0: i32, %arg1: i32, %arg2: i32) -> (i32, i32, i32, i32) {
    %c0_i32 = arith.constant 0 : i32
    %c0_i32_0 = arith.constant 0 : i32
    %c0_i32_1 = arith.constant 0 : i32
    return %arg0, %arg1, %c0_i32, %c0_i32_0 : i32, i32, i32, i32
  }
}

</mosaic_0001>

<bundles_post_ra>
// kernel: two_stage_loss.1
= control target key start
LH: loop header
LB: loop body
LE: loop exit
PB: predicated region body
PF: predicated region fallthrough
CT: control target
= control target key end

     0   :  { %s658_s15 = smov 0   ;;  %s660_s16 = smov 0   ;;  %s717_s0 = inlined_call_operand.vmem [shape: f32[2,2,1,256], index: 0, kind: input, shape index: {}]   ;;  %s718_s1 = inlined_call_operand.vmem [shape: f32[2,1,1,256], index: 1, kind: input, shape index: {}]   ;;  %s719_s2 = inlined_call_operand.vmem [shape: s8[2,1,256], index: 2, kind: input, shape index: {}]   ;;  %s720_s3 = inlined_call_operand.vmem [shape: f32[2,1,1,256], index: 3, kind: output, shape index: {0}]   ;;  %s721_s4 = inlined_call_operand.vmem [shape: f32[2,1,1,256], index: 4, kind: output, shape index: {1}]  }
   0x1   :  { %s662_s17 = smov 0  }
   0x2 LB: > { %s34_s18 = sadd.s32 1, %s626_s16  ;;  %p569_p0 = scmp.ge.s32.totalorder %s630_s17, 1  ;;  %s630_s17 = sphi %s662_s17, %s15_s17   ;;  %s626_s16 = sphi %s660_s16, %s725_s16   ;;  %s622_s15 = sphi %s658_s15, %s724_s15  }
   0x3   : > { %p36_p1 = scmp.ge.s32.totalorder %s34_s18, 2  ;;  %p235_p2 = scmp.lt.s32.totalorder %s630_s17, 3 }
   0x5   : > { %s727_s18 = smov (%p36_p1, %s34_s18), 0  ;;  %p236_p3 = pnand %p569_p0, %p235_p2 }
   0x6   : > { %p295_p4 = scmp.lt.s32.totalorder (!%p236_p3), %s622_s15, 1 }
   0x7   : > { %239 = sbr.rel (%p236_p3) target bundleno = 46 (0x2e), region = 32 }
   0xc   : > { %v344_v0 = vlaneseq  ;;  %s729_s15 = smov (!%p295_p4, %s622_s15), 1  ;;  %v632_v4 = vmov 0.0   ;;  %vm362_vm2 = vcmask 1040384  }
   0xd   : > { %s570_s19 = sshll.u32 %s729_s15, 2  ;;  %s571_s20 = sshll.u32 %s729_s15, 1 }
   0xe   : > { %vm676_vm0 = vcmp.lt.s32.totalorder %v344_v0, 256  ;;  %s302_s23 = scalar_lea.vmem %s717_s0, %s570_s19  ;;  %s312_s26 = scalar_lea.vmem %s718_s1, %s571_s20 }
   0xf   : > { %s322_s29 = scalar_lea.vmem %s719_s2, %s571_s20  ;;  %s692_s6 = scalar_lea.vmem %s720_s3, %s571_s20  ;;  %v575_v2 = vld [vmem:[%s302_s23 + $0x2] sm:$0x3]  ;;  %v353_v3 = vld [vmem:[%s312_s26] sm:$0x3] }
  0x10   : > { %348 = vst.msk [vmem:[%s692_s6] sm:$0x3] %vm676_vm0, %v632_v4  ;;  %v354_v5 = vld [vmem:[%s322_s29] sm:$0x3]  ;;  %s339_s9 = scalar_lea.vmem %s721_s4, %s571_s20  ;;  %v369_v7 = vand.u32 2147483647, %v575_v2 }
  0x11   : > { %v355_v6 = vunpack.c.0.s8 %v354_v5  ;;  %349 = vst.msk [vmem:[%s339_s9] sm:$0x3] %vm676_vm0, %v632_v4  ;;  %vm357_vm1 = vcmp.gt.f32.partialorder %v353_v3, 0.1  ;;  %v350_v8 = vld [vmem:[%s302_s23] sm:$0x3] }
  0x12   : > { %v370_v10 = vsub.f32 0.0, %v369_v7  ;;  %v576_v11 = vsel %vm357_vm1, 1.0, %v632_v4  ;;  %v383_v14 = vsub.f32 %v350_v8, %v353_v3  ;;  %v366_v25 = vmax.f32 %v575_v2, 0.0 }
  0x13   : > { %v356_v9 = vcvt.s32.f32 %v355_v6 }
  0x14   : > { %v371_v13 = vmul.f32 1.442695, %v370_v10 }
  0x15   : > { %v361_v12 = vrot.slane %v356_v9, 3 }
  0x16   : > { %604 = vpow2.f32 %v371_v13 }
  0x17   : > { %v363_v15 = vsel %vm362_vm2, %v356_v9, %v361_v12  ;;  %v386_v33 = vld [vmem:[%s692_s6] sm:$0x3] }
  0x18   : > { %v365_v16 = vmul.f32 %v576_v11, %v363_v15  ;;  %v393_v18 = vld [vmem:[%s339_s9] sm:$0x3] }
  0x1a   : > { %v384_v17 = vmul.f32 %v383_v14, %v365_v16  ;;  %v367_v26 = vmul.f32 %v575_v2, %v365_v16 }
  0x1c   : > { %v385_v19 = vand.u32 2147483647, %v384_v17  ;;  %v605_v20 = vpop.eup %604  ;;  %v368_v30 = vsub.f32 %v366_v25, %v367_v26 }
  0x1d   : > { %v373_v21 = vadd.f32 1.0, %v605_v20  ;;  %v376_v22 = vmul.f32 -0.5, %v605_v20  ;;  %v379_v27 = vand.u32 2147483647, %v605_v20 }
  0x1e   : > { %v394_v23 = vadd.f32 %v393_v18, %v385_v19 }
  0x1f   : > { %606 = vlog2.f32 %v373_v21  ;;  %v377_v24 = vadd.f32 1.0, %v376_v22  ;;  %vm380_vm3 = vcmp.lt.f32.partialorder %v379_v27, 0.0004427343 }
  0x20   : > { %395 = vst.msk [vmem:[%s339_s9] sm:$0x3] %vm676_vm0, %v394_v23 }
  0x21   : > { %v378_v28 = vmul.f32 %v605_v20, %v377_v24 }
  0x25   : > { %v607_v29 = vpop.eup %606 }
  0x26   : > { %v375_v31 = vmul.f32 0.6931472, %v607_v29 }
  0x28   : > { %v381_v32 = vsel %vm380_vm3, %v378_v28, %v375_v31 }
  0x29   : > { %v382_v34 = vadd.f32 %v381_v32, %v368_v30 }
  0x2b   : > { %v387_v35 = vadd.f32 %v386_v33, %v382_v34 }
  0x2d   : > { %392 = vst.msk [vmem:[%s692_s6] sm:$0x3] %vm676_vm0, %v387_v35 }
  0x2e PF: > { %s15_s17 = sadd.s32 1, %s630_s17   ;;  %s724_s15 = smov %s626_s16 }
  0x2f   : > { %p12_p5 = scmp.ge.s32.totalorder %s15_s17, 4   ;;  %s725_s16 = smov %s727_s18 }
  0x31   :  { %14 = sbr.rel (!%p12_p5) target bundleno = 2 (0x2), region = 85 }

</bundles_post_ra>
